<compile_context>
chip_gen: v5e
topology: v5e:2x2
jax: 0.10.0
libtpu: 0.0.40
codegen_flags: <defaults>
</compile_context>

<pallas_src>
import functools
import math

import jax
import jax.numpy as jnp
from jax import lax
from jax.experimental import pallas as pl
from jax.experimental.pallas import tpu as pltpu

LN_EPS = 1e-5                    # nn.LayerNorm default
LANE = 128                       # lane width; H, C padded to this
INV_SQRT2 = 1.0 / math.sqrt(2.0)


def _round_up(v, m):
    return (v + m - 1) // m * m


def _downstream_head_kernel(x_ref, wbig_ref, w2_ref, bias_ref, o_ref,
                            *, e_dim, hp, cp):
    # x_ref:    (TB, N*E)          lane-dense flattened tokens
    # wbig_ref: (N*E, LANE + HP)   [:, :LANE] = Pc (zero-padded)
    #                              [:, LANE:] = Pc @ (gamma*w1) (zero-padded)
    # w2_ref:   (HP, CP)           zero-padded classifier weights
    # bias_ref: (2, max(HP,CP))    row 0: beta@w1 + b1 ; row 1: b2 (padded)
    x = x_ref[...].astype(jnp.float32)

    # One lane-dense MXU matmul computes both the centered pooled vector c
    # and the (pre-scale) Linear1 activations.
    fused = jnp.dot(x, wbig_ref[...], preferred_element_type=jnp.float32)
    c = fused[:, :LANE]           # centered pooled features (padded lanes = 0)
    h_pre = fused[:, LANE:]       # (TB, HP)

    # LayerNorm variance from c; zero-padded lanes contribute nothing.
    var = jnp.sum(c * c, axis=-1, keepdims=True) * (1.0 / e_dim)
    inv_sigma = lax.rsqrt(var + LN_EPS)

    bias = bias_ref[...]
    h = h_pre * inv_sigma + bias[0:1, :hp]

    # Exact (erf) GELU — matches nn.GELU() default. GELU(0) == 0, so the
    # zero-padded hidden lanes stay exactly zero.
    h = 0.5 * h * (1.0 + lax.erf(h * INV_SQRT2))

    out = jnp.dot(h, w2_ref[...], preferred_element_type=jnp.float32)
    o_ref[...] = (out + bias[1:2, :cp]).astype(o_ref.dtype)


def downstream_head(x, gamma, beta, w1, b1, w2, b2, *, tb_cap=512):
    """x: (B, N, E) float32; params as in the PyTorch module.
    Returns (B, num_class) float32."""
    B, N, E = x.shape
    H = w1.shape[1]
    C = w2.shape[1]
    NE = N * E
    HP = _round_up(H, LANE)
    CP = _round_up(C, LANE)
    LP = max(HP, CP)

    # --- parameter prep (tiny, outside the kernel) -------------------------
    w1f = gamma[:, None] * w1.astype(jnp.float32)        # fold LN gamma
    b1f = beta @ w1 + b1                                  # fold LN beta

    eye = jnp.eye(E, dtype=jnp.float32)
    pool = jnp.tile(eye, (N, 1)) * (1.0 / N)              # (NE, E): mean over n
    pc = pool @ (eye - 1.0 / E)                           # (NE, E): + centering
    m1 = pc @ w1f                                         # (NE, H)

    wbig = jnp.zeros((NE, LANE + HP), jnp.float32)
    wbig = wbig.at[:, :E].set(pc)
    wbig = wbig.at[:, LANE:LANE + H].set(m1)

    w2p = jnp.zeros((HP, CP), jnp.float32).at[:H, :C].set(w2)
    bias = jnp.zeros((2, LP), jnp.float32)
    bias = bias.at[0, :H].set(b1f)
    bias = bias.at[1, :C].set(b2)

    # --- lane-dense x: pooling already folded into the matmul --------------
    x2 = x.reshape(B, NE)                                  # free reshape, no pad

    # --- batch tiling -------------------------------------------------------
    if B >= 8:
        TB = min(tb_cap, (B // 8) * 8)
        # v7x megacore: prefer >= 2 grid steps when the batch allows it.
        if pl.cdiv(B, TB) < 2 and B >= 16:
            TB = max(8, ((B // 2) // 8) * 8)
    else:
        TB = B                                             # block == full batch dim
    grid = (pl.cdiv(B, TB),)      # ragged last tile handled by Pallas masking

    kernel = functools.partial(_downstream_head_kernel, e_dim=E, hp=HP, cp=CP)

    out = pl.pallas_call(
        kernel,
        out_shape=jax.ShapeDtypeStruct((B, CP), jnp.float32),
        grid=grid,
        in_specs=[
            pl.BlockSpec((TB, NE), lambda i: (i, 0)),           # x (pipelined)
            pl.BlockSpec((NE, LANE + HP), lambda i: (0, 0)),    # fused weights (resident)
            pl.BlockSpec((HP, CP), lambda i: (0, 0)),           # w2 (resident)
            pl.BlockSpec((2, LP), lambda i: (0, 0)),            # bias slab (resident)
        ],
        out_specs=pl.BlockSpec((TB, CP), lambda i: (i, 0)),
        compiler_params=pltpu.CompilerParams(
            dimension_semantics=("parallel",)),                 # v7x: 2 TCs
    )(x2, wbig, w2p, bias)

    return out[:, :C]


def reference(x, gamma, beta, w1, b1, w2, b2):
    pooled = jnp.mean(x, axis=1)
    mu = jnp.mean(pooled, axis=-1, keepdims=True)
    var = jnp.mean((pooled - mu) ** 2, axis=-1, keepdims=True)
    normed = (pooled - mu) / jnp.sqrt(var + LN_EPS) * gamma + beta
    h = normed @ w1 + b1
    h = 0.5 * h * (1.0 + lax.erf(h / jnp.sqrt(2.0)))
    return h @ w2 + b2


if __name__ == "__main__":
    # Shapes consistent with the module's forward:
    #   predictor_network_embedding_dim = 32
    #   classification_embedding_dim    = 64
    #   num_class                       = 77
    B, N, E, H, C = 2, 8, 32, 64, 77

    key = jax.random.PRNGKey(0)
    kx, kg, kb, kw1, kb1, kw2, kb2 = jax.random.split(key, 7)

    x = jax.random.normal(kx, (B, N, E), dtype=jnp.float32)
    gamma = 1.0 + 0.02 * jax.random.normal(kg, (E,), dtype=jnp.float32)
    beta = 0.02 * jax.random.normal(kb, (E,), dtype=jnp.float32)
    w1 = jax.random.normal(kw1, (E, H), dtype=jnp.float32) / math.sqrt(E)
    b1 = 0.01 * jax.random.normal(kb1, (H,), dtype=jnp.float32)
    w2 = jax.random.normal(kw2, (H, C), dtype=jnp.float32) / math.sqrt(H)
    b2 = 0.01 * jax.random.normal(kb2, (C,), dtype=jnp.float32)

    out = downstream_head(x, gamma, beta, w1, b1, w2, b2)
    out = jax.block_until_ready(out)

    ref = reference(x, gamma, beta, w1, b1, w2, b2)
    assert out.shape == (B, C), out.shape
    assert jnp.allclose(out, ref, atol=2e-4, rtol=2e-4), \
        float(jnp.max(jnp.abs(out - ref)))

    print("KERNEL_OK")
</pallas_src>

<mosaic_0001>
module attributes {stable_mosaic.version = 11 : i64} {
  func.func @_downstream_head_kernel(%arg0: i32, %arg1: memref<2x256xf32, #tpu.memory_space<vmem>>, %arg2: memref<256x256xf32, #tpu.memory_space<vmem>>, %arg3: memref<128x128xf32, #tpu.memory_space<vmem>>, %arg4: memref<2x128xf32, #tpu.memory_space<vmem>>, %arg5: memref<2x128xf32, #tpu.memory_space<vmem>>) attributes {dimension_semantics = [#tpu.dimension_semantics<parallel>], iteration_bounds = array<i64: 1>, scalar_prefetch = 0 : i64, scratch_operands = 0 : i64, tpu.core_type = #tpu.core_type<tc>, window_params = [{transform_indices = @transform_0, window_bounds = array<i64: 2, 256>}, {pipeline_mode = #tpu.pipeline_mode<synchronous>, transform_indices = @transform_1, window_bounds = array<i64: 256, 256>}, {pipeline_mode = #tpu.pipeline_mode<synchronous>, transform_indices = @transform_2, window_bounds = array<i64: 128, 128>}, {pipeline_mode = #tpu.pipeline_mode<synchronous>, transform_indices = @transform_3, window_bounds = array<i64: 2, 128>}, {transform_indices = @transform_4, window_bounds = array<i64: 2, 128>}]} {
    %c0 = arith.constant 0 : index
    %c0_0 = arith.constant 0 : index
    %0 = vector.load %arg1[%c0, %c0_0] : memref<2x256xf32, #tpu.memory_space<vmem>>, vector<2x256xf32>
    %c0_1 = arith.constant 0 : index
    %c0_2 = arith.constant 0 : index
    %1 = vector.load %arg2[%c0_1, %c0_2] : memref<256x256xf32, #tpu.memory_space<vmem>>, vector<256x256xf32>
    %cst = arith.constant dense<0.000000e+00> : vector<2x256xf32>
    %2 = tpu.matmul %0, %1, %cst {dimension_numbers = #tpu.dot_dimension_numbers<[1], [0], [0], [1], [0, 0, 1, 1], [], []>} : vector<2x256xf32>, vector<256x256xf32>, vector<2x256xf32> -> vector<2x256xf32>
    %3 = vector.extract_strided_slice %2 {offsets = [0, 0], sizes = [2, 128], strides = [1, 1]} : vector<2x256xf32> to vector<2x128xf32>
    %4 = vector.extract_strided_slice %2 {offsets = [0, 128], sizes = [2, 128], strides = [1, 1]} : vector<2x256xf32> to vector<2x128xf32>
    %5 = arith.mulf %3, %3 : vector<2x128xf32>
    %cst_3 = arith.constant dense<0.000000e+00> : vector<2xf32>
    %6 = vector.multi_reduction <add>, %5, %cst_3 [1] : vector<2x128xf32> to vector<2xf32>
    %7 = vector.shape_cast %6 : vector<2xf32> to vector<2x1xf32>
    %cst_4 = arith.constant 3.125000e-02 : f32
    %8 = vector.broadcast %cst_4 : f32 to vector<2x1xf32>
    %9 = arith.mulf %7, %8 : vector<2x1xf32>
    %cst_5 = arith.constant 9.99999974E-6 : f32
    %10 = vector.broadcast %cst_5 : f32 to vector<2x1xf32>
    %11 = arith.addf %9, %10 : vector<2x1xf32>
    %12 = math.rsqrt %11 : vector<2x1xf32>
    %c0_6 = arith.constant 0 : index
    %c0_7 = arith.constant 0 : index
    %13 = vector.load %arg4[%c0_6, %c0_7] : memref<2x128xf32, #tpu.memory_space<vmem>>, vector<2x128xf32>
    %14 = vector.broadcast %12 : vector<2x1xf32> to vector<2x128xf32>
    %15 = arith.mulf %4, %14 : vector<2x128xf32>
    %16 = vector.extract_strided_slice %13 {offsets = [0, 0], sizes = [1, 128], strides = [1, 1]} : vector<2x128xf32> to vector<1x128xf32>
    %17 = vector.broadcast %16 : vector<1x128xf32> to vector<2x128xf32>
    %18 = arith.addf %15, %17 : vector<2x128xf32>
    %cst_8 = arith.constant 5.000000e-01 : f32
    %19 = vector.broadcast %cst_8 : f32 to vector<2x128xf32>
    %20 = arith.mulf %19, %18 : vector<2x128xf32>
    %cst_9 = arith.constant 0.707106769 : f32
    %21 = vector.broadcast %cst_9 : f32 to vector<2x128xf32>
    %22 = arith.mulf %18, %21 : vector<2x128xf32>
    %23 = math.erf %22 : vector<2x128xf32>
    %cst_10 = arith.constant 1.000000e+00 : f32
    %24 = vector.broadcast %cst_10 : f32 to vector<2x128xf32>
    %25 = arith.addf %24, %23 : vector<2x128xf32>
    %26 = arith.mulf %20, %25 : vector<2x128xf32>
    %c0_11 = arith.constant 0 : index
    %c0_12 = arith.constant 0 : index
    %27 = vector.load %arg3[%c0_11, %c0_12] : memref<128x128xf32, #tpu.memory_space<vmem>>, vector<128x128xf32>
    %cst_13 = arith.constant dense<0.000000e+00> : vector<2x128xf32>
    %28 = tpu.matmul %26, %27, %cst_13 {dimension_numbers = #tpu.dot_dimension_numbers<[1], [0], [0], [1], [0, 0, 1, 1], [], []>} : vector<2x128xf32>, vector<128x128xf32>, vector<2x128xf32> -> vector<2x128xf32>
    %29 = vector.extract_strided_slice %13 {offsets = [1, 0], sizes = [1, 128], strides = [1, 1]} : vector<2x128xf32> to vector<1x128xf32>
    %30 = vector.broadcast %29 : vector<1x128xf32> to vector<2x128xf32>
    %31 = arith.addf %28, %30 : vector<2x128xf32>
    %c0_14 = arith.constant 0 : index
    %c0_15 = arith.constant 0 : index
    %32 = vector.load %arg5[%c0_14, %c0_15] : memref<2x128xf32, #tpu.memory_space<vmem>>, vector<2x128xf32>
    tpu.vector_store %arg5[%c0_14, %c0_15], %31 {strides = array<i32>} : memref<2x128xf32, #tpu.memory_space<vmem>>, vector<2x128xf32>,
    return
  }
  func.func @transform_0(%arg0: i32) -> (i32, i32) {
    %c0_i32 = arith.constant 0 : i32
    %c0_i32_0 = arith.constant 0 : i32
    return %arg0, %c0_i32 : i32, i32
  }
  func.func @transform_1(%arg0: i32) -> (i32, i32) {
    %c0_i32 = arith.constant 0 : i32
    %c0_i32_0 = arith.constant 0 : i32
    %c0_i32_1 = arith.constant 0 : i32
    return %c0_i32, %c0_i32_0 : i32, i32
  }
  func.func @transform_2(%arg0: i32) -> (i32, i32) {
    %c0_i32 = arith.constant 0 : i32
    %c0_i32_0 = arith.constant 0 : i32
    %c0_i32_1 = arith.constant 0 : i32
    return %c0_i32, %c0_i32_0 : i32, i32
  }
  func.func @transform_3(%arg0: i32) -> (i32, i32) {
    %c0_i32 = arith.constant 0 : i32
    %c0_i32_0 = arith.constant 0 : i32
    %c0_i32_1 = arith.constant 0 : i32
    return %c0_i32, %c0_i32_0 : i32, i32
  }
  func.func @transform_4(%arg0: i32) -> (i32, i32) {
    %c0_i32 = arith.constant 0 : i32
    %c0_i32_0 = arith.constant 0 : i32
    return %arg0, %c0_i32 : i32, i32
  }
}

</mosaic_0001>

<bundles_post_ra>
// kernel: tpu_custom_call.1
= control target key start
LH: loop header
LB: loop body
LE: loop exit
PB: predicated region body
PF: predicated region fallthrough
CT: control target
= control target key end

     0   :  { %9 = vsyncpa [#allocation3], 0  ;;  %s502_s0 = inlined_call_operand.hbm [shape: f32[2,256], index: 0, kind: input, shape index: {}]   ;;  %s503_s1 = inlined_call_operand.hbm [shape: f32[256,256], index: 1, kind: input, shape index: {}]   ;;  %s504_s2 = inlined_call_operand.hbm [shape: f32[128,128], index: 2, kind: input, shape index: {}]   ;;  %s505_s3 = inlined_call_operand.vmem [shape: f32[2,128], index: 3, kind: input, shape index: {}]   ;;  %s506_s4 = inlined_call_operand.hbm [shape: f32[2,128], index: 4, kind: output, shape index: {}]  }
   0x1   :  { %10 = vsyncpa [#allocation6], 0  ;;  %s27_s17 = sshll.u32 %s503_s1, 4  ;;  %s28_s17 = int_to_ptr.hbm [resolvable:$true] %s27_s17 }
   0x2   :  { %11 = vsyncpa [#allocation4], 0  ;;  %s450_s18 = smov [#allocation5]   ;;  %s17_s22 = sshll.u32 %s502_s0, 4  ;;  %s18_s22 = int_to_ptr.hbm [resolvable:$true] %s17_s22 }
   0x3   :  { %s29_s19 = sshll.u32 %s450_s18, 4  ;;  %s451_s23 = smov 256   ;;  %s30_s19 = int_to_ptr.vmem [resolvable:$true] %s29_s19 }
   0x4   :  { %s452_s24 = smov 16   ;;  %s453_s25 = smov [#allocation2]  }
   0x5   :  { %35 = dma.hbm_to_vmem [thread:$0]  %s28_s17, 8192, %s30_s19, [#allocation6], %s451_s23, %s451_s23, %s452_s24  }
   0x6   :  { %s19_s26 = sshll.u32 %s453_s25, 4  ;;  %s40_s29 = sshll.u32 %s504_s2, 4  ;;  %s20_s26 = int_to_ptr.vmem [resolvable:$true] %s19_s26  ;;  %s41_s29 = int_to_ptr.hbm [resolvable:$true] %s40_s29 }
   0x7   :  { %22 = dma.hbm_to_vmem [thread:$0]  %s18_s22, 64, %s20_s26, [#allocation3]  }
   0x8   :  { %s454_s1 = smov [#allocation7]   ;;  %s455_s5 = smov 128  }
   0x9   :  { %s42_s30 = sshll.u32 %s454_s1, 4  ;;  %s456_s6 = smov 8   ;;  %s43_s30 = int_to_ptr.vmem [resolvable:$true] %s42_s30 }
   0xa   :  { %48 = dma.hbm_to_vmem [thread:$0]  %s41_s29, 2048, %s43_s30, [#allocation6], %s455_s5, %s455_s5, %s456_s6  }
   0xb   :  { %444 = dma.done.wait [#allocation3], 64  }
   0xc   :  { %445 = vsyncadd [#allocation3], 4294967232 }
   0xd   :  { %446 = dma.done.wait [#allocation6], 10240  }
   0xe   :  { %447 = vsyncadd [#allocation6], 4294957056  ;;  %v94_v0 = vld [vmem:[#allocation5 + $0xf0] sm:$0xff]  ;;  %v92_v2 = vld [vmem:[#allocation5 + $0xe0] sm:$0xff]  ;;  %vm215_vm0 = vcmask 1041408   ;;  %s324_s10 = sshll.u32 %s506_s4, 4  ;;  %s325_s10 = int_to_ptr.hbm [resolvable:$true] %s324_s10 }
   0xf   :  { %v126_v1 = vld [vmem:[#allocation5 + $0x1f0] sm:$0xff]  ;;  %134 = vmatpush.msra.mxu0 %v94_v0  ;;  %v124_v3 = vld [vmem:[#allocation5 + $0x1e0] sm:$0xff]  ;;  %v63_v14 = vld [vmem:[#allocation2] sm:$0xf] }
  0x10   :  { %154 = vmatpush.msra.mxu1 %v126_v1  ;;  %v90_v4 = vld [vmem:[#allocation5 + $0xd0] sm:$0xff]  ;;  %v88_v6 = vld [vmem:[#allocation5 + $0xc0] sm:$0xff]  ;;  %129 = vst [vmem:[#allocation1] ss:$4 sm:$0xff] %v63_v14  ;;  %v95_v15 = vld [vmem:[#allocation5 + $0xf8] sm:$0xff] }
  0x11   :  { %v122_v5 = vld [vmem:[#allocation5 + $0x1d0] sm:$0xff]  ;;  %135 = vmatpush.msra.mxu0 %v92_v2  ;;  %v120_v7 = vld [vmem:[#allocation5 + $0x1c0] sm:$0xff]  ;;  %v127_v16 = vld [vmem:[#allocation5 + $0x1f8] sm:$0xff]  ;;  %174 = vmatpush.msra.mxu2 %v95_v15 }
  0x12   :  { %155 = vmatpush.msra.mxu1 %v124_v3  ;;  %v86_v8 = vld [vmem:[#allocation5 + $0xb0] sm:$0xff]  ;;  %v84_v10 = vld [vmem:[#allocation5 + $0xa0] sm:$0xff]  ;;  %v93_v17 = vld [vmem:[#allocation5 + $0xe8] sm:$0xff]  ;;  %194 = vmatpush.msra.mxu3 %v127_v16 }
  0x13   :  { %136 = vmatpush.msra.mxu0 %v90_v4  ;;  %v118_v9 = vld [vmem:[#allocation5 + $0x1b0] sm:$0xff]  ;;  %v116_v11 = vld [vmem:[#allocation5 + $0x1a0] sm:$0xff]  ;;  %v125_v20 = vld [vmem:[#allocation5 + $0x1e8] sm:$0xff]  ;;  %175 = vmatpush.msra.mxu2 %v93_v17 }
  0x14   :  { %156 = vmatpush.msra.mxu1 %v122_v5  ;;  %v82_v12 = vld [vmem:[#allocation5 + $0x90] sm:$0xff]  ;;  %v80_v18 = vld [vmem:[#allocation5 + $0x80] sm:$0xff]  ;;  %v91_v21 = vld [vmem:[#allocation5 + $0xd8] sm:$0xff]  ;;  %195 = vmatpush.msra.mxu3 %v125_v20 }
  0x15   :  { %137 = vmatpush.msra.mxu0 %v88_v6  ;;  %v114_v13 = vld [vmem:[#allocation5 + $0x190] sm:$0xff]  ;;  %v112_v19 = vld [vmem:[#allocation5 + $0x180] sm:$0xff]  ;;  %v123_v22 = vld [vmem:[#allocation5 + $0x1d8] sm:$0xff]  ;;  %176 = vmatpush.msra.mxu2 %v91_v21 }
  0x16   :  { %157 = vmatpush.msra.mxu1 %v120_v7  ;;  %v78_v23 = vld [vmem:[#allocation5 + $0x70] sm:$0xff]  ;;  %v89_v25 = vld [vmem:[#allocation5 + $0xc8] sm:$0xff]  ;;  %v76_v27 = vld [vmem:[#allocation5 + $0x60] sm:$0xff]  ;;  %196 = vmatpush.msra.mxu3 %v123_v22 }
  0x17   :  { %138 = vmatpush.msra.mxu0 %v86_v8  ;;  %v110_v24 = vld [vmem:[#allocation5 + $0x170] sm:$0xff]  ;;  %v121_v26 = vld [vmem:[#allocation5 + $0x1c8] sm:$0xff]  ;;  %v108_v28 = vld [vmem:[#allocation5 + $0x160] sm:$0xff]  ;;  %177 = vmatpush.msra.mxu2 %v89_v25 }
  0x18   :  { %158 = vmatpush.msra.mxu1 %v118_v9  ;;  %v87_v29 = vld [vmem:[#allocation5 + $0xb8] sm:$0xff]  ;;  %v74_v31 = vld [vmem:[#allocation5 + $0x50] sm:$0xff]  ;;  %197 = vmatpush.msra.mxu3 %v121_v26  ;;  %v85_v33 = vld [vmem:[#allocation5 + $0xa8] sm:$0xff] }
  0x19   :  { %139 = vmatpush.msra.mxu0 %v84_v10  ;;  %v119_v30 = vld [vmem:[#allocation5 + $0x1b8] sm:$0xff]  ;;  %v106_v32 = vld [vmem:[#allocation5 + $0x150] sm:$0xff]  ;;  %v117_v34 = vld [vmem:[#allocation5 + $0x1a8] sm:$0xff]  ;;  %178 = vmatpush.msra.mxu2 %v87_v29 }
  0x1a   :  { %159 = vmatpush.msra.mxu1 %v116_v11  ;;  %v72_v35 = vld [vmem:[#allocation5 + $0x40] sm:$0xff]  ;;  %198 = vmatpush.msra.mxu3 %v119_v30  ;;  %v83_v37 = vld [vmem:[#allocation5 + $0x98] sm:$0xff]  ;;  %v70_v39 = vld [vmem:[#allocation5 + $0x30] sm:$0xff] }
  0x1b   :  { %140 = vmatpush.msra.mxu0 %v82_v12  ;;  %v104_v36 = vld [vmem:[#allocation5 + $0x140] sm:$0xff]  ;;  %v115_v38 = vld [vmem:[#allocation5 + $0x198] sm:$0xff]  ;;  %v102_v40 = vld [vmem:[#allocation5 + $0x130] sm:$0xff]  ;;  %179 = vmatpush.msra.mxu2 %v85_v33 }
  0x1c   :  { %160 = vmatpush.msra.mxu1 %v114_v13  ;;  %199 = vmatpush.msra.mxu3 %v117_v34  ;;  %v81_v41 = vld [vmem:[#allocation5 + $0x88] sm:$0xff]  ;;  %v68_v43 = vld [vmem:[#allocation5 + $0x20] sm:$0xff]  ;;  %v79_v45 = vld [vmem:[#allocation5 + $0x78] sm:$0xff] }
  0x1d   :  { %141 = vmatpush.msra.mxu0 %v80_v18  ;;  %v113_v42 = vld [vmem:[#allocation5 + $0x188] sm:$0xff]  ;;  %v100_v44 = vld [vmem:[#allocation5 + $0x120] sm:$0xff]  ;;  %180 = vmatpush.msra.mxu2 %v83_v37  ;;  %v111_v46 = vld [vmem:[#allocation5 + $0x178] sm:$0xff] }
  0x1e   :  { %161 = vmatpush.msra.mxu1 %v112_v19  ;;  %200 = vmatpush.msra.mxu3 %v115_v38  ;;  %v66_v47 = vld [vmem:[#allocation5 + $0x10] sm:$0xff]  ;;  %v77_v49 = vld [vmem:[#allocation5 + $0x68] sm:$0xff]  ;;  %v64_v51 = vld [vmem:[#allocation5] sm:$0xff] }
  0x1f   :  { %142 = vmatpush.msra.mxu0 %v78_v23  ;;  %v98_v48 = vld [vmem:[#allocation5 + $0x110] sm:$0xff]  ;;  %181 = vmatpush.msra.mxu2 %v81_v41  ;;  %v109_v50 = vld [vmem:[#allocation5 + $0x168] sm:$0xff]  ;;  %v96_v52 = vld [vmem:[#allocation5 + $0x100] sm:$0xff] }
  0x20   :  { %162 = vmatpush.msra.mxu1 %v110_v24  ;;  %201 = vmatpush.msra.mxu3 %v113_v42  ;;  %v130_v53 = vld.sshfl [vmem:[#allocation1] sm:$0xff pattern:$0x73625140]  ;;  %v131_v54 = vld.sshfl [vmem:[#allocation1 + $0x8] sm:$0xff pattern:$0x73625140] }
  0x21   :  { %143 = vmatpush.msra.mxu0 %v76_v27  ;;  %182 = vmatpush.msra.mxu2 %v79_v45  ;;  %v75_v55 = vld [vmem:[#allocation5 + $0x58] sm:$0xff]  ;;  %v73_v57 = vld [vmem:[#allocation5 + $0x48] sm:$0xff]  ;;  %v293_v18 = vld [vmem:[#allocation7 + $0x70] sm:$0xff] }
  0x22   :  { %163 = vmatpush.msra.mxu1 %v108_v28  ;;  %202 = vmatpush.msra.mxu3 %v111_v46  ;;  %v107_v56 = vld [vmem:[#allocation5 + $0x158] sm:$0xff]  ;;  %v105_v58 = vld [vmem:[#allocation5 + $0x148] sm:$0xff]  ;;  %v495_v20 = vld [vmem:[%s505_s3] sm:$0x3]  ;;  %s457_s3 = smov [#allocation8]  }
  0x23   :  { %144 = vmatpush.msra.mxu0 %v74_v31  ;;  %183 = vmatpush.msra.mxu2 %v77_v49  ;;  %v71_v59 = vld [vmem:[#allocation5 + $0x38] sm:$0xff]  ;;  %v69_v61 = vld [vmem:[#allocation5 + $0x28] sm:$0xff]  ;;  %v291_v24 = vld [vmem:[#allocation7 + $0x60] sm:$0xff]  ;;  %v233_v25 = vperm.slane %v495_v20, 0  ;;  %s322_s7 = sshll.u32 %s457_s3, 4  ;;  %s323_s7 = int_to_ptr.vmem [resolvable:$true] %s322_s7 }
  0x24   :  { %164 = vmatpush.msra.mxu1 %v106_v32  ;;  %203 = vmatpush.msra.mxu3 %v109_v50  ;;  %v103_v60 = vld [vmem:[#allocation5 + $0x138] sm:$0xff]  ;;  %v101_v62 = vld [vmem:[#allocation5 + $0x128] sm:$0xff]  ;;  %v289_v28 = vld [vmem:[#allocation7 + $0x50] sm:$0xff] }
  0x25   :  { %145 = vmatpush.msra.mxu0 %v72_v35  ;;  %184 = vmatpush.msra.mxu2 %v75_v55  ;;  %v67_v63 = vld [vmem:[#allocation5 + $0x18] sm:$0xff]  ;;  %v65_v1 = vld [vmem:[#allocation5 + $0x8] sm:$0xff]  ;;  %v287_v32 = vld [vmem:[#allocation7 + $0x40] sm:$0xff] }
  0x26   :  { %165 = vmatpush.msra.mxu1 %v104_v36  ;;  %204 = vmatpush.msra.mxu3 %v107_v56  ;;  %v99_v0 = vld [vmem:[#allocation5 + $0x118] sm:$0xff]  ;;  %v97_v2 = vld [vmem:[#allocation5 + $0x108] sm:$0xff]  ;;  %v285_v36 = vld [vmem:[#allocation7 + $0x30] sm:$0xff] }
  0x27   :  { %146 = vmatpush.msra.mxu0 %v70_v39  ;;  %185 = vmatpush.msra.mxu2 %v73_v57  ;;  %v294_v14 = vld [vmem:[#allocation7 + $0x78] sm:$0xff]  ;;  %v292_v21 = vld [vmem:[#allocation7 + $0x68] sm:$0xff]  ;;  %v283_v41 = vld [vmem:[#allocation7 + $0x20] sm:$0xff] }
  0x28   :  { %166 = vmatpush.msra.mxu1 %v102_v40  ;;  %205 = vmatpush.msra.mxu3 %v105_v58  ;;  %v290_v26 = vld [vmem:[#allocation7 + $0x58] sm:$0xff]  ;;  %v288_v30 = vld [vmem:[#allocation7 + $0x48] sm:$0xff] }
  0x29   :  { %147 = vmatpush.msra.mxu0 %v68_v43  ;;  %186 = vmatpush.msra.mxu2 %v71_v59  ;;  %v286_v34 = vld [vmem:[#allocation7 + $0x38] sm:$0xff]  ;;  %v284_v38 = vld [vmem:[#allocation7 + $0x28] sm:$0xff] }
  0x2a   :  { %167 = vmatpush.msra.mxu1 %v100_v44  ;;  %206 = vmatpush.msra.mxu3 %v103_v60  ;;  %v282_v44 = vld [vmem:[#allocation7 + $0x18] sm:$0xff]  ;;  %v280_v50 = vld [vmem:[#allocation7 + $0x8] sm:$0xff] }
  0x2b   :  { %148 = vmatpush.msra.mxu0 %v66_v47  ;;  %187 = vmatpush.msra.mxu2 %v69_v61  ;;  %v281_v47 = vld [vmem:[#allocation7 + $0x10] sm:$0xff] }
  0x2c   :  { %168 = vmatpush.msra.mxu1 %v98_v48  ;;  %207 = vmatpush.msra.mxu3 %v101_v62 }
  0x2d   :  { %149 = vmatpush.msra.mxu0 %v64_v51  ;;  %188 = vmatpush.msra.mxu2 %v67_v63 }
  0x2e   :  { %169 = vmatpush.msra.mxu1 %v96_v52  ;;  %150 = vmatmul.f32.vlgmr.msra.gmra.mxu0 %v130_v53  ;;  %v279_v52 = vld [vmem:[#allocation7] sm:$0xff] }
  0x2f   :  { %170 = vmatmul.f32.vlgmr.msra.gmra.mxu1 %v131_v54  ;;  %208 = vmatpush.msra.mxu3 %v99_v0 }
  0x30   :  { %189 = vmatpush.msra.mxu2 %v65_v1  ;;  %296 = vmatpush.msrb.mxu0 %v294_v14 }
  0x31   :  { %209 = vmatpush.msra.mxu3 %v97_v2  ;;  %190 = vmatmul.f32.vlgmr.msra.gmra.mxu2 %v130_v53 }
  0x32   :  { %210 = vmatmul.f32.vlgmr.msra.gmra.mxu3 %v131_v54  ;;  %297 = vmatpush.msrb.mxu0 %v293_v18 }
  0x34   :  { %298 = vmatpush.msrb.mxu0 %v292_v21 }
  0x36   :  { %299 = vmatpush.msrb.mxu0 %v291_v24 }
  0x38   :  { %300 = vmatpush.msrb.mxu0 %v290_v26 }
  0x3a   :  { %301 = vmatpush.msrb.mxu0 %v289_v28 }
  0x3c   :  { %302 = vmatpush.msrb.mxu0 %v288_v30 }
  0x3e   :  { %303 = vmatpush.msrb.mxu0 %v287_v32 }
  0x40   :  { %304 = vmatpush.msrb.mxu0 %v286_v34 }
  0x42   :  { %305 = vmatpush.msrb.mxu0 %v285_v36 }
  0x44   :  { %306 = vmatpush.msrb.mxu0 %v284_v38 }
  0x46   :  { %307 = vmatpush.msrb.mxu0 %v283_v41 }
  0x48   :  { %308 = vmatpush.msrb.mxu0 %v282_v44 }
  0x4a   :  { %309 = vmatpush.msrb.mxu0 %v281_v47 }
  0x4c   :  { %310 = vmatpush.msrb.mxu0 %v280_v50 }
  0x4e   :  { %311 = vmatpush.msrb.mxu0 %v279_v52 }
  0xab   :  { %v151_v3 = vpop.f32.mrf.mxu0 }
  0xac   :  { %v171_v4 = vpop.f32.mrf.mxu1 }
  0xad   :  { %v172_v5 = vadd.f32 %v171_v4, %v151_v3 }
  0xaf   :  { %v214_v6 = vmul.f32 %v172_v5, %v172_v5 }
  0xb1   :  { %v216_v7 = vsel %vm215_vm0, %v214_v6, 0.0 }
  0xb2   :  { %217 = vadd.xlane.f32.xlu0 %v216_v7 }
  0xb4   :  { %v191_v16 = vpop.f32.mrf.mxu2 }
  0xb5   :  { %v211_v17 = vpop.f32.mrf.mxu3 }
  0xb6   :  { %v212_v22 = vadd.f32 %v211_v17, %v191_v16  ;;  %v295_v16 = vperm.slane %v495_v20, 1 }
 0x125   :  { %v218_v8 = vpop.xlane.xlu0 %217 }
 0x126   :  { %v219_v9 = vmul.f32 0.03125, %v218_v8 }
 0x128   :  { %v220_v10 = vadd.f32 1e-05, %v219_v9 }
 0x12a   :  { %344 = vrsqrt.f32 %v220_v10  ;;  %vm227_vm2 = vweird.f32 %v220_v10 }
 0x130   :  { %v345_v11 = vpop.eup %344 }
 0x131   :  { %v222_v12 = vmul.f32 %v345_v11, %v220_v10  ;;  %vm228_vm1 = vweird.f32 %v345_v11 }
 0x132   :  { %vm229_vm3 = vmor %vm227_vm2, %vm228_vm1 }
 0x133   :  { %v223_v13 = vmul.f32 %v345_v11, %v222_v12 }
 0x135   :  { %v224_v15 = vmul.f32 0.5, %v223_v13 }
 0x137   :  { %v225_v19 = vsub.f32 1.5, %v224_v15 }
 0x139   :  { %v226_v23 = vmul.f32 %v345_v11, %v225_v19 }
 0x13b   :  { %v230_v27 = vsel %vm229_vm3, %v345_v11, %v226_v23 }
 0x13c   :  { %v232_v29 = vmul.f32 %v230_v27, %v212_v22 }
 0x13e   :  { %v234_v31 = vadd.f32 %v233_v25, %v232_v29 }
 0x140   :  { %v236_v33 = vmul.f32 0.70710677, %v234_v31  ;;  %v235_v13 = vmul.f32 0.5, %v234_v31 }
 0x142   :  { %v237_v35 = vmul.f32 %v236_v33, %v236_v33 }
 0x144   :  { %v238_v37 = vmin.f32 %v237_v35, 16.0 }
 0x146   :  { %v239_v39 = vmul.f32 2.1237322e-06, %v238_v37  ;;  %v250_v40 = vmul.f32 3.8918573e-05, %v238_v37 }
 0x148   :  { %v240_v42 = vadd.f32 0.00028619796, %v239_v39  ;;  %v251_v43 = vadd.f32 0.001143296, %v250_v40 }
 0x14a   :  { %v241_v45 = vmul.f32 %v240_v42, %v238_v37  ;;  %v252_v46 = vmul.f32 %v251_v43, %v238_v37 }
 0x14c   :  { %v253_v48 = vadd.f32 0.014752088, %v252_v46  ;;  %v242_v49 = vadd.f32 0.0036580483, %v241_v45 }
 0x14e   :  { %v254_v51 = vmul.f32 %v253_v48, %v238_v37  ;;  %v243_v54 = vmul.f32 %v242_v49, %v238_v37 }
 0x150   :  { %v255_v53 = vadd.f32 0.112945676, %v254_v51  ;;  %v244_v57 = vadd.f32 0.05243302, %v243_v54 }
 0x152   :  { %v256_v55 = vmul.f32 %v255_v53, %v238_v37  ;;  %v245_v60 = vmul.f32 %v244_v57, %v238_v37 }
 0x154   :  { %v257_v56 = vadd.f32 0.4994258, %v256_v55  ;;  %v246_v61 = vadd.f32 0.18741608, %v245_v60 }
 0x156   :  { %v258_v58 = vmul.f32 %v257_v56, %v238_v37  ;;  %v247_v63 = vmul.f32 %v246_v61, %v238_v37 }
 0x158   :  { %v259_v59 = vadd.f32 1.0, %v258_v58  ;;  %v248_v3 = vadd.f32 1.1283791, %v247_v63 }
 0x15a   :  { %346 = vrcp.f32 %v259_v59  ;;  %v271_v2 = vand.u32 2147483648, %v259_v59  ;;  %v269_v5 = vand.u32 2147483647, %v259_v59  ;;  %vm265_vm5 = vweird.f32 %v259_v59 }
 0x15b   :  { %v249_v8 = vmul.f32 %v248_v3, %v236_v33 }
 0x15c   :  { %v272_v7 = vor.u32 1.1754944e-38, %v271_v2  ;;  %vm270_vm7 = vcmp.eq.f32.partialorder %v269_v5, 8.507059e+37 }
 0x160   :  { %v347_v62 = vpop.eup %346 }
 0x161   :  { %v261_v0 = vmul.f32 %v347_v62, %v259_v59  ;;  %vm266_vm4 = vweird.f32 %v347_v62 }
 0x162   :  { %vm267_vm6 = vmor %vm265_vm5, %vm266_vm4 }
 0x163   :  { %v262_v1 = vsub.f32 1.0, %v261_v0 }
 0x165   :  { %v263_v4 = vmul.f32 %v347_v62, %v262_v1 }
 0x167   :  { %v264_v6 = vadd.f32 %v347_v62, %v263_v4 }
 0x169   :  { %v268_v9 = vsel %vm267_vm6, %v347_v62, %v264_v6 }
 0x16a   :  { %v273_v10 = vsel %vm270_vm7, %v272_v7, %v268_v9 }
 0x16b   :  { %v274_v11 = vmul.f32 %v273_v10, %v249_v8 }
 0x16d   :  { %v335_v12 = vclamps-f32 %v274_v11, 1.0 }
 0x16f   :  { %v277_v14 = vadd.f32 1.0, %v335_v12 }
 0x171   :  { %v278_v15 = vmul.f32 %v277_v14, %v235_v13 }
 0x173   :  { %312 = vmatmul.f32.vlgmr.msrb.gmra.mxu0 %v278_v15 }
 0x1f0   :  { %v313_v17 = vpop.f32.mrf.mxu0 }
 0x1f1   :  { %v314_v18 = vadd.f32 %v313_v17, %v295_v16 }
 0x1f3   :  { %316 = vst [vmem:[#allocation8] sm:$0x3] %v314_v18 }
 0x1f4   :  { %327 = dma.vmem_to_hbm [thread:$0]  %s323_s7, 32, %s325_s10, [#allocation4]  }
 0x1f5   :  { %448 = dma.done.wait [#allocation4], 32  }
 0x1f6   :  { %449 = vsyncadd [#allocation4], 4294967264 }
 0x1f7   :  { %332 = vsyncpa [#allocation3], 1 }
 0x1f8   :  { %333 = vsyncpa [#allocation6], 1 }
 0x1f9   :  { %334 = vsyncpa [#allocation4], 1 }

</bundles_post_ra>
